<compile_context>
chip_gen: v7x
topology: tpu7x:2x2x1
jax: 0.10.0
libtpu: 0.0.40
codegen_flags: <defaults>
</compile_context>

<pallas_src>
import functools
import math

import jax
import jax.numpy as jnp
from jax.experimental import pallas as pl
from jax.experimental.pallas import tpu as pltpu

LN_EPS = 1e-5
_MIB = 1024 * 1024


def _round_up(x, m):
    return ((x + m - 1) // m) * m


# ---------------------------------------------------------------------------
# Kernel
# ---------------------------------------------------------------------------
def _ffn_kernel(x_ref, g_ref, b_ref, w1_ref, b1_ref, w2_ref, b2_ref, o_ref,
                xn_ref, acc_ref, *, d_valid, matmul_dtype):
    k = pl.program_id(1)

    @pl.when(k == 0)
    def _():
        # LayerNorm over the true feature dim, computed once per row tile.
        x = x_ref[...].astype(jnp.float32)
        _, dp = x.shape
        inv_d = 1.0 / float(d_valid)
        mu = jnp.sum(x, axis=-1, keepdims=True) * inv_d        # pad lanes are 0
        xc = x - mu
        if d_valid != dp:                                       # compile-time
            lane = jax.lax.broadcasted_iota(jnp.int32, (1, dp), 1)
            xc = jnp.where(lane < d_valid, xc, 0.0)
        var = jnp.sum(xc * xc, axis=-1, keepdims=True) * inv_d
        xn = xc * jax.lax.rsqrt(var + LN_EPS) * g_ref[...] + b_ref[...]
        xn_ref[...] = xn.astype(matmul_dtype)
        acc_ref[...] = jnp.zeros_like(acc_ref)

    # One hidden chunk: gelu(xn @ W1[:, th] + b1[th]) @ W2[th, :], accumulated.
    h = jnp.dot(xn_ref[...], w1_ref[...],
                preferred_element_type=jnp.float32) + b1_ref[...]
    # Exact-erf GELU (matches torch.nn.GELU default).
    h = 0.5 * h * (1.0 + jax.lax.erf(h * (1.0 / math.sqrt(2.0))))
    # Dropout(p=0.0) is the identity (eval semantics).
    # TODO(synk): training-mode dropout (p>0) would need pltpu.prng_* masking.
    acc_ref[...] += jnp.dot(h.astype(matmul_dtype), w2_ref[...],
                            preferred_element_type=jnp.float32)

    @pl.when(k == pl.num_programs(1) - 1)
    def _():
        o_ref[...] = (acc_ref[...] + b2_ref[...]).astype(o_ref.dtype)


# ---------------------------------------------------------------------------
# Parameter prep (do this once at init time, cache the result)
# ---------------------------------------------------------------------------
def prepare_ffn_params(gamma, beta, w1, b1, w2, b2, *, matmul_dtype=jnp.bfloat16):
    """w1: (D, H), w2: (H, D) (already transposed vs torch Linear)."""
    D, H = w1.shape
    Dp, Hp = _round_up(D, 128), _round_up(H, 128)
    f32 = jnp.float32
    g2 = jnp.zeros((1, Dp), f32).at[:, :D].set(gamma.reshape(1, D).astype(f32))
    bt2 = jnp.zeros((1, Dp), f32).at[:, :D].set(beta.reshape(1, D).astype(f32))
    w1p = jnp.zeros((Dp, Hp), matmul_dtype).at[:D, :H].set(w1.astype(matmul_dtype))
    b1p = jnp.zeros((1, Hp), f32).at[:, :H].set(b1.reshape(1, H).astype(f32))
    w2p = jnp.zeros((Hp, Dp), matmul_dtype).at[:H, :D].set(w2.astype(matmul_dtype))
    b2p = jnp.zeros((1, Dp), f32).at[:, :D].set(b2.reshape(1, D).astype(f32))
    return dict(D=D, H=H, Dp=Dp, Hp=Hp, matmul_dtype=matmul_dtype,
                gamma=g2, beta=bt2, w1=w1p, b1=b1p, w2=w2p, b2=b2p)


# ---------------------------------------------------------------------------
# Tiling heuristics
# ---------------------------------------------------------------------------
def _vmem_budget_bytes(frac=0.82):
    phys = 128 * _MIB
    try:
        phys = int(getattr(pltpu.get_tpu_info(), "vmem_capacity_bytes", phys))
    except Exception:
        pass
    return int(phys * frac)   # ~52 MiB on v7x (64 MiB), ~105 MiB on v5e/v6e


def _pick_tm(rows, tile_rows):
    rows8 = _round_up(rows, 8)
    cands = sorted({_round_up(t, 8)
                    for t in (tile_rows, 512, 384, 256, 128, 64, 32, 16, 8)
                    if t <= tile_rows}, reverse=True)
    best, best_key = rows8, None
    for t in cands:
        if t > rows8:
            continue
        rp = _round_up(rows8, t)
        # minimize padding waste, then prefer >= 4 row-grid steps, then bigger tile
        key = (rp - rows8, 0 if rp // t >= 4 else 1, -t)
        if best_key is None or key < best_key:
            best, best_key = t, key
    return best


def _pick_th(Hp, hidden_tile):
    ht = max(128, (hidden_tile // 128) * 128)
    for t in sorted({ht, 512, 384, 256, 128}, reverse=True):
        if t <= ht and Hp % t == 0:
            return t
    return 128


def _vmem_estimate(tm, th, Dp, x_bytes, out_bytes, w_bytes):
    x_tile = 2 * tm * Dp * x_bytes                 # double-buffered input tile
    o_tile = 2 * tm * Dp * out_bytes               # double-buffered output tile
    w_tile = 2 * (Dp * th + th * Dp) * w_bytes     # W1/W2 chunks, double-buffered
    small = 2 * (3 * Dp + th) * 4                  # gamma/beta/b2 + b1 chunk
    scratch = tm * Dp * (4 + w_bytes)              # f32 accumulator + cached xn
    interm = 2 * tm * th * 4                       # live f32 hidden chunk headroom
    return x_tile + o_tile + w_tile + small + scratch + interm


# ---------------------------------------------------------------------------
# Forward
# ---------------------------------------------------------------------------
def feed_forward(x, params, *, tile_rows=512, hidden_tile=512):
    """x: (B, N, D). params: output of prepare_ffn_params."""
    B, N, D = x.shape
    assert D == params["D"], (D, params["D"])
    Dp, Hp, H = params["Dp"], params["Hp"], params["H"]
    matmul_dtype = params["matmul_dtype"]
    rows = B * N

    w_bytes = jnp.dtype(matmul_dtype).itemsize
    x_bytes = jnp.dtype(x.dtype).itemsize

    tm = _pick_tm(rows, max(8, tile_rows))
    th = _pick_th(Hp, hidden_tile)

    budget = _vmem_budget_bytes()
    while _vmem_estimate(tm, th, Dp, x_bytes, x_bytes, w_bytes) > budget:
        smaller_th = [t for t in (384, 256, 128) if t < th and Hp % t == 0]
        if smaller_th:
            th = smaller_th[0]
        elif tm > 8:
            tm = max(8, _round_up(tm // 2, 8))
        else:
            break

    rows_p = _round_up(rows, tm)
    grid = (rows_p // tm, Hp // th)

    # Pass x straight through (native dtype, no copy) when already aligned.
    x2 = x.reshape(rows, D)
    padded = (rows_p != rows) or (Dp != D)
    if padded:
        x2 = jnp.zeros((rows_p, Dp), x.dtype).at[:rows, :D].set(x2)

    est = _vmem_estimate(tm, th, Dp, x_bytes, x_bytes, w_bytes)
    vmem_limit = int(min(budget, max(32 * _MIB, 2 * est)))

    cost = pl.CostEstimate(
        flops=4 * rows * D * H,                     # two matmuls (true dims)
        transcendentals=rows * H,                   # erf in GELU
        bytes_accessed=(2 * rows * D * x_bytes
                        + 2 * D * H * w_bytes
                        + (2 * D + H) * 4),
    )

    kernel = functools.partial(_ffn_kernel, d_valid=D, matmul_dtype=matmul_dtype)

    out = pl.pallas_call(
        kernel,
        out_shape=jax.ShapeDtypeStruct((rows_p, Dp), x.dtype),
        grid_spec=pltpu.PrefetchScalarGridSpec(
            num_scalar_prefetch=0,
            grid=grid,
            in_specs=[
                pl.BlockSpec((tm, Dp), lambda i, k: (i, 0)),   # x row tile (resident over k)
                pl.BlockSpec((1, Dp), lambda i, k: (0, 0)),    # gamma
                pl.BlockSpec((1, Dp), lambda i, k: (0, 0)),    # beta
                pl.BlockSpec((Dp, th), lambda i, k: (0, k)),   # W1 hidden chunk
                pl.BlockSpec((1, th), lambda i, k: (0, k)),    # b1 hidden chunk
                pl.BlockSpec((th, Dp), lambda i, k: (k, 0)),   # W2 hidden chunk
                pl.BlockSpec((1, Dp), lambda i, k: (0, 0)),    # b2
            ],
            out_specs=pl.BlockSpec((tm, Dp), lambda i, k: (i, 0)),
            scratch_shapes=[
                pltpu.VMEM((tm, Dp), matmul_dtype),  # cached LayerNorm output
                pltpu.VMEM((tm, Dp), jnp.float32),   # output accumulator
            ],
        ),
        compiler_params=pltpu.CompilerParams(
            dimension_semantics=("parallel", "arbitrary"),
            vmem_limit_bytes=vmem_limit,
        ),
        cost_estimate=cost,
    )(x2, params["gamma"], params["beta"], params["w1"], params["b1"],
      params["w2"], params["b2"])

    if padded:
        out = out[:rows, :D]
    return out.reshape(B, N, D)


# ---------------------------------------------------------------------------
# Reference + test
# ---------------------------------------------------------------------------
def _reference(x, gamma, beta, w1, b1, w2, b2):
    xf = x.astype(jnp.float32)
    mu = jnp.mean(xf, axis=-1, keepdims=True)
    var = jnp.mean((xf - mu) ** 2, axis=-1, keepdims=True)
    xn = (xf - mu) * jax.lax.rsqrt(var + LN_EPS) * gamma + beta
    h = xn @ w1 + b1
    h = 0.5 * h * (1.0 + jax.lax.erf(h / math.sqrt(2.0)))
    return (h @ w2 + b2).astype(x.dtype)


if __name__ == "__main__":
    key = jax.random.PRNGKey(0)

    # --- Shape 1 (module-scale): B=2, N=8, dim=32, hidden=64 ---
    B, N, D, Hd = 2, 8, 32, 64
    k_x, k_w1, k_b1, k_w2, k_b2, key = jax.random.split(key, 6)
    x = jax.random.normal(k_x, (B, N, D), dtype=jnp.float32)
    gamma = jnp.ones((D,), jnp.float32)
    beta = jnp.zeros((D,), jnp.float32)
    # torch Linear weight is (out, in); the kernel takes the transposed (in, out).
    w1 = jax.random.normal(k_w1, (D, Hd), jnp.float32) * (1.0 / math.sqrt(D))
    b1 = jax.random.normal(k_b1, (Hd,), jnp.float32) * 0.01
    w2 = jax.random.normal(k_w2, (Hd, D), jnp.float32) * (1.0 / math.sqrt(Hd))
    b2 = jax.random.normal(k_b2, (D,), jnp.float32) * 0.01

    ref = _reference(x, gamma, beta, w1, b1, w2, b2)

    # Exact path (f32 matmul operands) -> tight tolerance.
    p_f32 = prepare_ffn_params(gamma, beta, w1, b1, w2, b2, matmul_dtype=jnp.float32)
    out_f32 = jax.block_until_ready(feed_forward(x, p_f32))
    assert out_f32.shape == (B, N, D)
    assert jnp.max(jnp.abs(out_f32 - ref)) < 1e-4

    # Fast path (bf16 matmul operands, f32 accumulate) -> relaxed tolerance.
    p_bf16 = prepare_ffn_params(gamma, beta, w1, b1, w2, b2, matmul_dtype=jnp.bfloat16)
    out_bf16 = jax.block_until_ready(feed_forward(x, p_bf16))
    assert out_bf16.shape == (B, N, D)
    assert jnp.max(jnp.abs(out_bf16 - ref)) < 5e-2

    # --- Shape 2: multi-step row grid, lane-aligned D (no x copy),
    #     hidden-axis accumulation over >1 chunk. ---
    B2, N2, D2, H2 = 2, 72, 128, 256
    k_x, k_w1, k_b1, k_w2, k_b2, k_g, k_b = jax.random.split(key, 7)
    x2 = jax.random.normal(k_x, (B2, N2, D2), dtype=jnp.float32)
    g2 = 1.0 + 0.1 * jax.random.normal(k_g, (D2,), jnp.float32)
    be2 = 0.1 * jax.random.normal(k_b, (D2,), jnp.float32)
    w1_2 = jax.random.normal(k_w1, (D2, H2), jnp.float32) * (1.0 / math.sqrt(D2))
    b1_2 = jax.random.normal(k_b1, (H2,), jnp.float32) * 0.01
    w2_2 = jax.random.normal(k_w2, (H2, D2), jnp.float32) * (1.0 / math.sqrt(H2))
    b2_2 = jax.random.normal(k_b2, (D2,), jnp.float32) * 0.01

    ref2 = _reference(x2, g2, be2, w1_2, b1_2, w2_2, b2_2)
    p2 = prepare_ffn_params(g2, be2, w1_2, b1_2, w2_2, b2_2, matmul_dtype=jnp.float32)
    out2 = jax.block_until_ready(feed_forward(x2, p2, tile_rows=64, hidden_tile=128))
    assert out2.shape == (B2, N2, D2)
    assert jnp.max(jnp.abs(out2 - ref2)) < 2e-4

    print("KERNEL_OK")
</pallas_src>

<mosaic_0001>
module attributes {stable_mosaic.version = 11 : i64} {
  func.func @_ffn_kernel(%arg0: i32, %arg1: i32, %arg2: memref<16x128xf32, #tpu.memory_space<vmem>>, %arg3: memref<1x128xf32, #tpu.memory_space<vmem>>, %arg4: memref<1x128xf32, #tpu.memory_space<vmem>>, %arg5: memref<128x128xf32, #tpu.memory_space<vmem>>, %arg6: memref<1x128xf32, #tpu.memory_space<vmem>>, %arg7: memref<128x128xf32, #tpu.memory_space<vmem>>, %arg8: memref<1x128xf32, #tpu.memory_space<vmem>>, %arg9: memref<16x128xf32, #tpu.memory_space<vmem>>, %arg10: memref<16x128xf32, #tpu.memory_space<vmem>>, %arg11: memref<16x128xf32, #tpu.memory_space<vmem>>) attributes {dimension_semantics = [#tpu.dimension_semantics<parallel>, #tpu.dimension_semantics<arbitrary>], iteration_bounds = array<i64: 1, 1>, scalar_prefetch = 0 : i64, scratch_operands = 2 : i64, tpu.core_type = #tpu.core_type<tc>, window_params = [{transform_indices = @transform_0, window_bounds = array<i64: 16, 128>}, {pipeline_mode = #tpu.pipeline_mode<synchronous>, transform_indices = @transform_1, window_bounds = array<i64: 1, 128>}, {pipeline_mode = #tpu.pipeline_mode<synchronous>, transform_indices = @transform_2, window_bounds = array<i64: 1, 128>}, {transform_indices = @transform_3, window_bounds = array<i64: 128, 128>}, {transform_indices = @transform_4, window_bounds = array<i64: 1, 128>}, {transform_indices = @transform_5, window_bounds = array<i64: 128, 128>}, {pipeline_mode = #tpu.pipeline_mode<synchronous>, transform_indices = @transform_6, window_bounds = array<i64: 1, 128>}, {transform_indices = @transform_7, window_bounds = array<i64: 16, 128>}]} {
    %c0_i32 = arith.constant 0 : i32
    %0 = arith.cmpi eq, %arg1, %c0_i32 : i32
    %1 = arith.extui %0 : i1 to i32
    %c0_i32_0 = arith.constant 0 : i32
    %2 = arith.cmpi ne, %1, %c0_i32_0 : i32
    scf.if %2 {
      %c0_18 = arith.constant 0 : index
      %c0_19 = arith.constant 0 : index
      %25 = vector.load %arg2[%c0_18, %c0_19] : memref<16x128xf32, #tpu.memory_space<vmem>>, vector<16x128xf32>
      %cst_20 = arith.constant dense<0.000000e+00> : vector<16xf32>
      %26 = vector.multi_reduction <add>, %25, %cst_20 [1] : vector<16x128xf32> to vector<16xf32>
      %27 = vector.shape_cast %26 : vector<16xf32> to vector<16x1xf32>
      %cst_21 = arith.constant 3.125000e-02 : f32
      %28 = vector.broadcast %cst_21 : f32 to vector<16x1xf32>
      %29 = arith.mulf %27, %28 : vector<16x1xf32>
      %30 = vector.broadcast %29 : vector<16x1xf32> to vector<16x128xf32>
      %31 = arith.subf %25, %30 : vector<16x128xf32>
      %32 = tpu.iota {dimensions = array<i32: 1>} : vector<1x128xi32>
      %c32_i32 = arith.constant 32 : i32
      %33 = vector.broadcast %c32_i32 : i32 to vector<1x128xi32>
      %34 = arith.cmpi slt, %32, %33 : vector<1x128xi32>
      %cst_22 = arith.constant 0.000000e+00 : f32
      %35 = vector.shape_cast %34 : vector<1x128xi1> to vector<1x128xi1>
      %36 = vector.broadcast %35 : vector<1x128xi1> to vector<16x128xi1>
      %37 = vector.broadcast %cst_22 : f32 to vector<16x128xf32>
      %38 = arith.select %36, %31, %37 : vector<16x128xi1>, vector<16x128xf32>
      %39 = arith.mulf %38, %38 : vector<16x128xf32>
      %cst_23 = arith.constant dense<0.000000e+00> : vector<16xf32>
      %40 = vector.multi_reduction <add>, %39, %cst_23 [1] : vector<16x128xf32> to vector<16xf32>
      %41 = vector.shape_cast %40 : vector<16xf32> to vector<16x1xf32>
      %cst_24 = arith.constant 3.125000e-02 : f32
      %42 = vector.broadcast %cst_24 : f32 to vector<16x1xf32>
      %43 = arith.mulf %41, %42 : vector<16x1xf32>
      %cst_25 = arith.constant 9.99999974E-6 : f32
      %44 = vector.broadcast %cst_25 : f32 to vector<16x1xf32>
      %45 = arith.addf %43, %44 : vector<16x1xf32>
      %46 = math.rsqrt %45 : vector<16x1xf32>
      %47 = vector.broadcast %46 : vector<16x1xf32> to vector<16x128xf32>
      %48 = arith.mulf %38, %47 : vector<16x128xf32>
      %c0_26 = arith.constant 0 : index
      %c0_27 = arith.constant 0 : index
      %49 = vector.load %arg3[%c0_26, %c0_27] : memref<1x128xf32, #tpu.memory_space<vmem>>, vector<1x128xf32>
      %50 = vector.broadcast %49 : vector<1x128xf32> to vector<16x128xf32>
      %51 = arith.mulf %48, %50 : vector<16x128xf32>
      %c0_28 = arith.constant 0 : index
      %c0_29 = arith.constant 0 : index
      %52 = vector.load %arg4[%c0_28, %c0_29] : memref<1x128xf32, #tpu.memory_space<vmem>>, vector<1x128xf32>
      %53 = vector.broadcast %52 : vector<1x128xf32> to vector<16x128xf32>
      %54 = arith.addf %51, %53 : vector<16x128xf32>
      %c0_30 = arith.constant 0 : index
      %c0_31 = arith.constant 0 : index
      %55 = vector.load %arg10[%c0_30, %c0_31] : memref<16x128xf32, #tpu.memory_space<vmem>>, vector<16x128xf32>
      tpu.vector_store %arg10[%c0_30, %c0_31], %54 {strides = array<i32>} : memref<16x128xf32, #tpu.memory_space<vmem>>, vector<16x128xf32>,
      %cst_32 = arith.constant 0.000000e+00 : f32
      %56 = vector.broadcast %cst_32 : f32 to vector<16x128xf32>
      %c0_33 = arith.constant 0 : index
      %c0_34 = arith.constant 0 : index
      %57 = vector.load %arg11[%c0_33, %c0_34] : memref<16x128xf32, #tpu.memory_space<vmem>>, vector<16x128xf32>
      tpu.vector_store %arg11[%c0_33, %c0_34], %56 {strides = array<i32>} : memref<16x128xf32, #tpu.memory_space<vmem>>, vector<16x128xf32>,
    } else {
    }
    %c0 = arith.constant 0 : index
    %c0_1 = arith.constant 0 : index
    %3 = vector.load %arg10[%c0, %c0_1] : memref<16x128xf32, #tpu.memory_space<vmem>>, vector<16x128xf32>
    %c0_2 = arith.constant 0 : index
    %c0_3 = arith.constant 0 : index
    %4 = vector.load %arg5[%c0_2, %c0_3] : memref<128x128xf32, #tpu.memory_space<vmem>>, vector<128x128xf32>
    %cst = arith.constant dense<0.000000e+00> : vector<16x128xf32>
    %5 = tpu.matmul %3, %4, %cst {dimension_numbers = #tpu.dot_dimension_numbers<[1], [0], [0], [1], [0, 0, 1, 1], [], []>} : vector<16x128xf32>, vector<128x128xf32>, vector<16x128xf32> -> vector<16x128xf32>
    %c0_4 = arith.constant 0 : index
    %c0_5 = arith.constant 0 : index
    %6 = vector.load %arg6[%c0_4, %c0_5] : memref<1x128xf32, #tpu.memory_space<vmem>>, vector<1x128xf32>
    %7 = vector.broadcast %6 : vector<1x128xf32> to vector<16x128xf32>
    %8 = arith.addf %5, %7 : vector<16x128xf32>
    %cst_6 = arith.constant 5.000000e-01 : f32
    %9 = vector.broadcast %cst_6 : f32 to vector<16x128xf32>
    %10 = arith.mulf %9, %8 : vector<16x128xf32>
    %cst_7 = arith.constant 0.707106769 : f32
    %11 = vector.broadcast %cst_7 : f32 to vector<16x128xf32>
    %12 = arith.mulf %8, %11 : vector<16x128xf32>
    %13 = math.erf %12 : vector<16x128xf32>
    %cst_8 = arith.constant 1.000000e+00 : f32
    %14 = vector.broadcast %cst_8 : f32 to vector<16x128xf32>
    %15 = arith.addf %14, %13 : vector<16x128xf32>
    %16 = arith.mulf %10, %15 : vector<16x128xf32>
    %c0_9 = arith.constant 0 : index
    %c0_10 = arith.constant 0 : index
    %17 = vector.load %arg11[%c0_9, %c0_10] : memref<16x128xf32, #tpu.memory_space<vmem>>, vector<16x128xf32>
    %c0_11 = arith.constant 0 : index
    %c0_12 = arith.constant 0 : index
    %18 = vector.load %arg7[%c0_11, %c0_12] : memref<128x128xf32, #tpu.memory_space<vmem>>, vector<128x128xf32>
    %cst_13 = arith.constant dense<0.000000e+00> : vector<16x128xf32>
    %19 = tpu.matmul %16, %18, %cst_13 {dimension_numbers = #tpu.dot_dimension_numbers<[1], [0], [0], [1], [0, 0, 1, 1], [], []>} : vector<16x128xf32>, vector<128x128xf32>, vector<16x128xf32> -> vector<16x128xf32>
    %20 = arith.addf %17, %19 : vector<16x128xf32>
    %c0_14 = arith.constant 0 : index
    %c0_15 = arith.constant 0 : index
    %21 = vector.load %arg11[%c0_14, %c0_15] : memref<16x128xf32, #tpu.memory_space<vmem>>, vector<16x128xf32>
    tpu.vector_store %arg11[%c0_14, %c0_15], %20 {strides = array<i32>} : memref<16x128xf32, #tpu.memory_space<vmem>>, vector<16x128xf32>,
    %c0_i32_16 = arith.constant 0 : i32
    %22 = arith.cmpi eq, %arg1, %c0_i32_16 : i32
    %23 = arith.extui %22 : i1 to i32
    %c0_i32_17 = arith.constant 0 : i32
    %24 = arith.cmpi ne, %23, %c0_i32_17 : i32
    scf.if %24 {
      %c0_18 = arith.constant 0 : index
      %c0_19 = arith.constant 0 : index
      %25 = vector.load %arg11[%c0_18, %c0_19] : memref<16x128xf32, #tpu.memory_space<vmem>>, vector<16x128xf32>
      %c0_20 = arith.constant 0 : index
      %c0_21 = arith.constant 0 : index
      %26 = vector.load %arg8[%c0_20, %c0_21] : memref<1x128xf32, #tpu.memory_space<vmem>>, vector<1x128xf32>
      %27 = vector.broadcast %26 : vector<1x128xf32> to vector<16x128xf32>
      %28 = arith.addf %25, %27 : vector<16x128xf32>
      %c0_22 = arith.constant 0 : index
      %c0_23 = arith.constant 0 : index
      %29 = vector.load %arg9[%c0_22, %c0_23] : memref<16x128xf32, #tpu.memory_space<vmem>>, vector<16x128xf32>
      tpu.vector_store %arg9[%c0_22, %c0_23], %28 {strides = array<i32>} : memref<16x128xf32, #tpu.memory_space<vmem>>, vector<16x128xf32>,
    } else {
    }
    return
  }
  func.func @transform_0(%arg0: i32, %arg1: i32) -> (i32, i32) {
    %c0_i32 = arith.constant 0 : i32
    %c0_i32_0 = arith.constant 0 : i32
    return %arg0, %c0_i32 : i32, i32
  }
  func.func @transform_1(%arg0: i32, %arg1: i32) -> (i32, i32) {
    %c0_i32 = arith.constant 0 : i32
    %c0_i32_0 = arith.constant 0 : i32
    %c0_i32_1 = arith.constant 0 : i32
    return %c0_i32, %c0_i32_0 : i32, i32
  }
  func.func @transform_2(%arg0: i32, %arg1: i32) -> (i32, i32) {
    %c0_i32 = arith.constant 0 : i32
    %c0_i32_0 = arith.constant 0 : i32
    %c0_i32_1 = arith.constant 0 : i32
    return %c0_i32, %c0_i32_0 : i32, i32
  }
  func.func @transform_3(%arg0: i32, %arg1: i32) -> (i32, i32) {
    %c0_i32 = arith.constant 0 : i32
    %c0_i32_0 = arith.constant 0 : i32
    return %c0_i32, %arg1 : i32, i32
  }
  func.func @transform_4(%arg0: i32, %arg1: i32) -> (i32, i32) {
    %c0_i32 = arith.constant 0 : i32
    %c0_i32_0 = arith.constant 0 : i32
    return %c0_i32, %arg1 : i32, i32
  }
  func.func @transform_5(%arg0: i32, %arg1: i32) -> (i32, i32) {
    %c0_i32 = arith.constant 0 : i32
    %c0_i32_0 = arith.constant 0 : i32
    return %arg1, %c0_i32 : i32, i32
  }
  func.func @transform_6(%arg0: i32, %arg1: i32) -> (i32, i32) {
    %c0_i32 = arith.constant 0 : i32
    %c0_i32_0 = arith.constant 0 : i32
    %c0_i32_1 = arith.constant 0 : i32
    return %c0_i32, %c0_i32_0 : i32, i32
  }
  func.func @transform_7(%arg0: i32, %arg1: i32) -> (i32, i32) {
    %c0_i32 = arith.constant 0 : i32
    %c0_i32_0 = arith.constant 0 : i32
    return %arg0, %c0_i32 : i32, i32
  }
}

</mosaic_0001>

<bundles_post_ra>
// kernel: tpu_custom_call.1
= control target key start
LH: loop header
LB: loop body
LE: loop exit
PB: predicated region body
PF: predicated region fallthrough
CT: control target
= control target key end

     0   :  { %12 = vsyncpa [#allocation5], 0  ;;  %s773_s0 = inlined_call_operand.hbm [shape: f32[16,128], index: 0, kind: input, shape index: {}]   ;;  %s774_s1 = inlined_call_operand.vmem [shape: f32[1,128], index: 1, kind: input, shape index: {}]   ;;  %s775_s2 = inlined_call_operand.vmem [shape: f32[1,128], index: 2, kind: input, shape index: {}]   ;;  %s776_s3 = inlined_call_operand.hbm [shape: f32[128,128], index: 3, kind: input, shape index: {}]   ;;  %s777_s4 = inlined_call_operand.vmem [shape: f32[1,128], index: 4, kind: input, shape index: {}]   ;;  %s778_s5 = inlined_call_operand.hbm [shape: f32[128,128], index: 5, kind: input, shape index: {}]   ;;  %s779_s6 = inlined_call_operand.vmem [shape: f32[1,128], index: 6, kind: input, shape index: {}]   ;;  %s780_s7 = inlined_call_operand.hbm [shape: f32[16,128], index: 7, kind: output, shape index: {}]  }
   0x1   :  { %13 = vsyncpa [#allocation8], 0 }
   0x2   :  { %14 = vsyncpa [#allocation6], 0  ;;  %s648_s24 = smov [#allocation7]   ;;  %s649_s26 = smov [#allocation4]  }
   0x3   :  { %s36_s25 = sshll.u32 %s648_s24, 4  ;;  %s20_s27 = sshll.u32 %s649_s26, 4  ;;  %s37_s25 = int_to_ptr.vmem [resolvable:$true] %s36_s25  ;;  %s694_s27 = int_to_ptr.vmem [resolvable:$true] %s20_s27 }
   0x4   :  { %s554_s30 = scalar_lea.hbm %s776_s3, 2048 }
   0x5   :  { %p555_p0 = scmp.ne.s32.totalorder %s776_s3, %s554_s30  ;;  %p558_p1 = scmp.lt.u32.totalorder %s554_s30, %s776_s3 }
   0x7   :  { %p560_p2 = pnand %p558_p1, %p555_p0 }
   0x9   :  { %563 = shalt.err (!%p560_p2)
}
   0xa   :  { %s564_s12 = scalar_lea.vmem %s37_s25, 2048  ;;  %p569_p4 = scmp.lt.s32.totalorder %s37_s25, %s37_s25 }
   0xb   :  { %p565_p3 = scmp.ne.s32.totalorder %s37_s25, %s564_s12  ;;  %p570_p5 = scmp.lt.s32.totalorder %s564_s12, %s564_s12 }
   0xd   :  { %p571_p6 = por %p570_p5, %p569_p4 }
   0xf   :  { %p572_p7 = pnand %p571_p6, %p565_p3 }
  0x11   :  { %575 = shalt.err (!%p572_p7)
}
  0x12   :  { %s650_s13 = smov 128   ;;  %s651_s14 = smov 8  }
  0x13   :  { %42 = dma.hbm_to_vmem [thread:$0]  %s776_s3, 2048, %s37_s25, [#allocation8], %s650_s13, %s650_s13, %s651_s14  }
  0x14   :  { %s576_s19 = scalar_lea.hbm %s773_s0, 256 }
  0x15   :  { %p577_p8 = scmp.ne.s32.totalorder %s773_s0, %s576_s19  ;;  %p580_p9 = scmp.lt.u32.totalorder %s576_s19, %s773_s0 }
  0x17   :  { %p582_p10 = pnand %p580_p9, %p577_p8 }
  0x19   :  { %585 = shalt.err (!%p582_p10)
}
  0x1a   :  { %s586_s24 = scalar_lea.vmem %s694_s27, 256  ;;  %p591_p12 = scmp.lt.s32.totalorder %s694_s27, %s694_s27 }
  0x1b   :  { %p587_p11 = scmp.ne.s32.totalorder %s694_s27, %s586_s24  ;;  %p592_p13 = scmp.lt.s32.totalorder %s586_s24, %s586_s24 }
  0x1d   :  { %p593_p0 = por %p592_p13, %p591_p12 }
  0x1f   :  { %p594_p1 = pnand %p593_p0, %p587_p11 }
  0x21   :  { %597 = shalt.err (!%p594_p1)
}
  0x22   :  { %26 = dma.hbm_to_vmem [thread:$0]  %s773_s0, 256, %s694_s27, [#allocation5], %s650_s13, %s650_s13, %s651_s14  }
  0x23   :  { %s652_s26 = smov [#allocation9]   ;;  %s598_s8 = scalar_lea.hbm %s778_s5, 2048 }
  0x24   :  { %s50_s28 = sshll.u32 %s652_s26, 4  ;;  %p599_p2 = scmp.ne.s32.totalorder %s778_s5, %s598_s8  ;;  %s51_s28 = int_to_ptr.vmem [resolvable:$true] %s50_s28 }
  0x25   :  { %p602_p3 = scmp.lt.u32.totalorder %s598_s8, %s778_s5 }
  0x27   :  { %p604_p4 = pnand %p602_p3, %p599_p2 }
  0x29   :  { %607 = shalt.err (!%p604_p4)
}
  0x2a   :  { %s608_s15 = scalar_lea.vmem %s51_s28, 2048  ;;  %p613_p6 = scmp.lt.s32.totalorder %s51_s28, %s51_s28 }
  0x2b   :  { %p609_p5 = scmp.ne.s32.totalorder %s51_s28, %s608_s15  ;;  %p614_p7 = scmp.lt.s32.totalorder %s608_s15, %s608_s15 }
  0x2d   :  { %p615_p8 = por %p614_p7, %p613_p6 }
  0x2f   :  { %p616_p9 = pnand %p615_p8, %p609_p5 }
  0x31   :  { %619 = shalt.err (!%p616_p9)
}
  0x32   :  { %56 = dma.hbm_to_vmem [thread:$0]  %s778_s5, 2048, %s51_s28, [#allocation8], %s650_s13, %s650_s13, %s651_s14  }
  0x33   :  { %642 = dma.done.wait [#allocation5], 256  }
  0x34   :  { %643 = vsyncadd [#allocation5], 4294967040 }
  0x35   :  { %644 = dma.done.wait [#allocation8], 4096  }
  0x36   :  { %645 = vsyncadd [#allocation8], 4294963200  ;;  %v72_v0 = vld [vmem:[#allocation4] sm:$0xff]  ;;  %v73_v1 = vld [vmem:[#allocation4 + $0x8] sm:$0xff]  ;;  %v82_v8 = vlaneseq  ;;  %s653_s20 = smov [#allocation10]  }
  0x37   :  { %74 = vadd.xlane.f32.xlu0 %v72_v0  ;;  %v127_v2 = vld [vmem:[#allocation7] sm:$0xff]  ;;  %v128_v3 = vld [vmem:[#allocation7 + $0x8] sm:$0xff]  ;;  %v129_v4 = vld [vmem:[#allocation7 + $0x10] sm:$0xff]  ;;  %s353_s21 = sshll.u32 %s653_s20, 4  ;;  %s354_s21 = int_to_ptr.vmem [resolvable:$true] %s353_s21 }
  0x38   :  { %v476_v5 = vpack.c.bf16 %v128_v3, %v127_v2  ;;  %v130_v6 = vld [vmem:[#allocation7 + $0x18] sm:$0xff]  ;;  %v83_v9 = vand.u32 127, %v82_v8  ;;  %v131_v20 = vld [vmem:[#allocation7 + $0x20] sm:$0xff]  ;;  %v132_v21 = vld [vmem:[#allocation7 + $0x28] sm:$0xff]  ;;  %s620_s22 = scalar_lea.vmem %s354_s21, 256  ;;  %p625_p11 = scmp.lt.s32.totalorder %s354_s21, %s354_s21 }
  0x39   :  { %v480_v7 = vpack.c.bf16 %v130_v6, %v129_v4  ;;  %v484_v22 = vpack.c.bf16 %v132_v21, %v131_v20  ;;  %v133_v23 = vld [vmem:[#allocation7 + $0x30] sm:$0xff]  ;;  %v134_v24 = vld [vmem:[#allocation7 + $0x38] sm:$0xff]  ;;  %v135_v26 = vld [vmem:[#allocation7 + $0x40] sm:$0xff]  ;;  %p621_p10 = scmp.ne.s32.totalorder %s354_s21, %s620_s22  ;;  %p626_p12 = scmp.lt.s32.totalorder %s620_s22, %s620_s22 }
  0x3a   :  { %477 = vmatprep.subr.bf16.mxu0 %v476_v5  ;;  %vm84_vm0 = vcmp.lt.s32.totalorder %v83_v9, 32  ;;  %v488_v25 = vpack.c.bf16 %v134_v24, %v133_v23  ;;  %v136_v27 = vld [vmem:[#allocation7 + $0x48] sm:$0xff]  ;;  %v137_v29 = vld [vmem:[#allocation7 + $0x50] sm:$0xff]  ;;  %v138_v30 = vld [vmem:[#allocation7 + $0x58] sm:$0xff] }
  0x3b   :  { %76 = vadd.xlane.f32.xlu0 %v73_v1  ;;  %479 = vmatpush3.bf16.msra.mxu0 %v476_v5  ;;  %v492_v28 = vpack.c.bf16 %v136_v27, %v135_v26  ;;  %v139_v31 = vld [vmem:[#allocation7 + $0x60] sm:$0xff]  ;;  %v496_v32 = vpack.c.bf16 %v138_v30, %v137_v29  ;;  %v140_v33 = vld [vmem:[#allocation7 + $0x68] sm:$0xff]  ;;  %v141_v35 = vld [vmem:[#allocation7 + $0x70] sm:$0xff]  ;;  %p627_p13 = por %p626_p12, %p625_p11 }
  0x3c   :  { %481 = vmatprep.subr.bf16.mxu0 %v480_v7  ;;  %v500_v34 = vpack.c.bf16 %v140_v33, %v139_v31  ;;  %v142_v36 = vld [vmem:[#allocation7 + $0x78] sm:$0xff]  ;;  %v237_v38 = vld [vmem:[#allocation9] sm:$0xff]  ;;  %v238_v39 = vld [vmem:[#allocation9 + $0x8] sm:$0xff] }
  0x3d   :  { %v504_v37 = vpack.c.bf16 %v142_v36, %v141_v35  ;;  %v239_v40 = vld [vmem:[#allocation9 + $0x10] sm:$0xff]  ;;  %v508_v41 = vpack.c.bf16 %v238_v39, %v237_v38  ;;  %v240_v42 = vld [vmem:[#allocation9 + $0x18] sm:$0xff]  ;;  %v241_v44 = vld [vmem:[#allocation9 + $0x20] sm:$0xff]  ;;  %p628_p0 = pnand %p627_p13, %p621_p10 }
  0x3e   :  { %v512_v43 = vpack.c.bf16 %v240_v42, %v239_v40  ;;  %v242_v45 = vld [vmem:[#allocation9 + $0x28] sm:$0xff]  ;;  %v366_v54 = vld [vmem:[%s774_s1] ss:$0 sm:$0xff]  ;;  %v245_v2 = vld [vmem:[#allocation9 + $0x40] sm:$0xff] }
  0x3f   :  { %483 = vmatpush3.bf16.msra.mxu0 %v480_v7  ;;  %509 = vmatprep.subr.bf16.mxu1 %v508_v41  ;;  %v516_v46 = vpack.c.bf16 %v242_v45, %v241_v44  ;;  %v367_v56 = vld [vmem:[%s775_s2] ss:$0 sm:$0xff]  ;;  %v246_v3 = vld [vmem:[#allocation9 + $0x48] sm:$0xff]  ;;  %v248_v6 = vld [vmem:[#allocation9 + $0x58] sm:$0xff] }
  0x40   :  { %485 = vmatprep.subr.bf16.mxu0 %v484_v22  ;;  %511 = vmatpush3.bf16.msra.mxu1 %v508_v41  ;;  %v243_v63 = vld [vmem:[#allocation9 + $0x30] sm:$0xff]  ;;  %v524_v4 = vpack.c.bf16 %v246_v3, %v245_v2  ;;  %v249_v8 = vld [vmem:[#allocation9 + $0x60] sm:$0xff]  ;;  %v250_v9 = vld [vmem:[#allocation9 + $0x68] sm:$0xff] }
  0x41   :  { %513 = vmatprep.subr.bf16.mxu1 %v512_v43  ;;  %v247_v5 = vld [vmem:[#allocation9 + $0x50] sm:$0xff] }
  0x42   :  { %v528_v7 = vpack.c.bf16 %v248_v6, %v247_v5  ;;  %v369_v29 = vld [vmem:[%s779_s6] ss:$0 sm:$0xff] }
  0x43   :  { %487 = vmatpush3.bf16.msra.mxu0 %v484_v22 }
  0x44   :  { %489 = vmatprep.subr.bf16.mxu0 %v488_v25  ;;  %515 = vmatpush3.bf16.msra.mxu1 %v512_v43 }
  0x45   :  { %517 = vmatprep.subr.bf16.mxu1 %v516_v46 }
  0x47   :  { %491 = vmatpush3.bf16.msra.mxu0 %v488_v25 }
  0x48   :  { %493 = vmatprep.subr.bf16.mxu0 %v492_v28  ;;  %519 = vmatpush3.bf16.msra.mxu1 %v516_v46 }
  0x4b   :  { %495 = vmatpush3.bf16.msra.mxu0 %v492_v28 }
  0x4c   :  { %497 = vmatprep.subr.bf16.mxu0 %v496_v32 }
  0x4f   :  { %499 = vmatpush3.bf16.msra.mxu0 %v496_v32 }
  0x50   :  { %501 = vmatprep.subr.bf16.mxu0 %v500_v34 }
  0x53   :  { %503 = vmatpush3.bf16.msra.mxu0 %v500_v34 }
  0x54   :  { %505 = vmatprep.subr.bf16.mxu0 %v504_v37 }
  0x57   :  { %507 = vmatpush3.bf16.msra.mxu0 %v504_v37 }
  0xc4   :  { %v75_v10 = vpop.xlane.xlu0 %74 }
  0xc5   :  { %v78_v11 = vmul.f32 0.03125, %v75_v10  ;;  %v532_v10 = vpack.c.bf16 %v250_v9, %v249_v8 }
  0xc7   :  { %v80_v12 = vsub.f32 %v72_v0, %v78_v11  ;;  %v244_v0 = vld [vmem:[#allocation9 + $0x38] sm:$0xff]  ;;  %v251_v11 = vld [vmem:[#allocation9 + $0x70] sm:$0xff] }
  0xc8   :  { %v77_v13 = vpop.xlane.xlu0 %76 }
  0xc9   :  { %v79_v14 = vmul.f32 0.03125, %v77_v13  ;;  %v87_v15 = vsel %vm84_vm0, %v80_v12, 0.0  ;;  %v252_v12 = vld [vmem:[#allocation9 + $0x78] sm:$0xff] }
  0xca   :  { %v89_v16 = vmul.f32 %v87_v15, %v87_v15  ;;  %v536_v13 = vpack.c.bf16 %v252_v12, %v251_v11 }
  0xcb   :  { %v81_v17 = vsub.f32 %v73_v1, %v79_v14  ;;  %v520_v1 = vpack.c.bf16 %v244_v0, %v243_v63  ;;  %v368_v14 = vld [vmem:[%s777_s4] ss:$0 sm:$0xff] }
  0xcc   :  { %91 = vadd.xlane.f32.xlu1 %v89_v16 }
  0xcd   :  { %v88_v18 = vsel %vm84_vm0, %v81_v17, 0.0  ;;  %521 = vmatprep.subr.bf16.mxu1 %v520_v1 }
  0xce   :  { %v90_v19 = vmul.f32 %v88_v18, %v88_v18  ;;  %523 = vmatpush3.bf16.msra.mxu1 %v520_v1 }
  0xcf   :  { %525 = vmatprep.subr.bf16.mxu1 %v524_v4 }
  0xd0   :  { %93 = vadd.xlane.f32.xlu1 %v90_v19 }
  0xd2   :  { %527 = vmatpush3.bf16.msra.mxu1 %v524_v4 }
  0xd3   :  { %529 = vmatprep.subr.bf16.mxu1 %v528_v7 }
  0xd6   :  { %531 = vmatpush3.bf16.msra.mxu1 %v528_v7 }
  0xd7   :  { %533 = vmatprep.subr.bf16.mxu1 %v532_v10 }
  0xda   :  { %535 = vmatpush3.bf16.msra.mxu1 %v532_v10 }
  0xdb   :  { %537 = vmatprep.subr.bf16.mxu1 %v536_v13 }
  0xde   :  { %539 = vmatpush3.bf16.msra.mxu1 %v536_v13 }
 0x159   :  { %v92_v47 = vpop.xlane.xlu1 %91 }
 0x15a   :  { %v95_v48 = vmul.f32 0.03125, %v92_v47 }
 0x15c   :  { %v97_v49 = vadd.f32 1e-05, %v95_v48 }
 0x15d   :  { %v94_v50 = vpop.xlane.xlu1 %93 }
 0x15e   :  { %546 = vrsqrt.f32 %v97_v49  ;;  %v96_v51 = vmul.f32 0.03125, %v94_v50 }
 0x160   :  { %v98_v52 = vadd.f32 1e-05, %v96_v51 }
 0x162   :  { %548 = vrsqrt.f32 %v98_v52 }
 0x168   :  { %v547_v53 = vpop.eup %546 }
 0x169   :  { %v101_v55 = vmul.f32 %v547_v53, %v87_v15 }
 0x16b   :  { %v110_v57 = vmul.f32 %v366_v54, %v101_v55 }
 0x16c   :  { %v549_v58 = vpop.eup %548 }
 0x16d   :  { %v102_v59 = vmul.f32 %v549_v58, %v88_v18  ;;  %v119_v60 = vadd.f32 %v367_v56, %v110_v57 }
 0x16f   :  { %v111_v61 = vmul.f32 %v366_v54, %v102_v59  ;;  %438 = vmatprep.mubr.f32.mxu0 %v119_v60 }
 0x171   :  { %v120_v62 = vadd.f32 %v367_v56, %v111_v61 }
 0x173   :  { %439 = vmatmul.mubr.f32.vlgmr.msra.gmra.mrb[0].mxu0 %v120_v62 }
 0x246   :  { %v440_v15 = vpop.f32.mrb[0].mxu0 }
 0x247   :  { %v222_v16 = vadd.f32 %v440_v15, %v368_v14  ;;  %v216_v17 = vpop.f32.mrb[1].mxu0 }
 0x248   :  { %v217_v18 = vadd.f32 %v368_v14, %v216_v17 }
 0x249   :  { %v228_v19 = vmul.f32 0.70710677, %v222_v16  ;;  %v226_v26 = vmul.f32 0.5, %v222_v16 }
 0x24a   :  { %v227_v20 = vmul.f32 0.70710677, %v217_v18  ;;  %v225_v24 = vmul.f32 0.5, %v217_v18 }
 0x24b   :  { %550 = verf.f32 %v228_v19 }
 0x24c   :  { %552 = verf.f32 %v227_v20 }
 0x255   :  { %v551_v21 = vpop.eup %550 }
 0x256   :  { %v553_v22 = vpop.eup %552  ;;  %v232_v23 = vadd.f32 1.0, %v551_v21 }
 0x257   :  { %v231_v25 = vadd.f32 1.0, %v553_v22 }
 0x258   :  { %v234_v28 = vmul.f32 %v232_v23, %v226_v26 }
 0x259   :  { %v233_v27 = vmul.f32 %v231_v25, %v225_v24 }
 0x25b   :  { %473 = vmatprep.mubr.f32.mxu1 %v233_v27 }
 0x25c   :  { %474 = vmatmul.mubr.f32.vlgmr.msra.gmra.mrb[0].mxu1 %v234_v28 }
 0x32f   :  { %v475_v30 = vpop.f32.mrb[0].mxu1 }
 0x330   :  { %v345_v31 = vadd.f32 %v475_v30, %v369_v29  ;;  %v319_v32 = vpop.f32.mrb[1].mxu1 }
 0x331   :  { %v344_v33 = vadd.f32 %v369_v29, %v319_v32 }
 0x332   :  { %347 = vst [vmem:[#allocation10 + $0x8] sm:$0xff] %v345_v31 }
 0x333   :  { %346 = vst [vmem:[#allocation10] sm:$0xff] %v344_v33 }
 0x334   :  { %631 = shalt.err (!%p628_p0)
}
 0x335   :  { %s632_s6 = scalar_lea.hbm %s780_s7, 256 }
 0x336   :  { %p633_p1 = scmp.ne.s32.totalorder %s780_s7, %s632_s6  ;;  %p636_p2 = scmp.lt.u32.totalorder %s632_s6, %s780_s7 }
 0x338   :  { %p638_p3 = pnand %p636_p2, %p633_p1 }
 0x33a   :  { %641 = shalt.err (!%p638_p3)
}
 0x33b   :  { %359 = dma.vmem_to_hbm [thread:$0]  %s354_s21, 256, %s780_s7, [#allocation6], %s650_s13, %s650_s13, %s651_s14  }
 0x33c   :  { %646 = dma.done.wait [#allocation6], 256  }
 0x33d   :  { %647 = vsyncadd [#allocation6], 4294967040 }
 0x33e   :  { %363 = vsyncpa [#allocation5], 1 }
 0x33f   :  { %364 = vsyncpa [#allocation8], 1 }
 0x340   :  { %365 = vsyncpa [#allocation6], 1 }

</bundles_post_ra>
